<compile_context>
chip_gen: v5e
topology: v5e:2x2
jax: 0.10.0
libtpu: 0.0.40
codegen_flags: <defaults>
</compile_context>

<pallas_src>
import functools

import jax
import jax.numpy as jnp
from jax.experimental import pallas as pl
from jax.experimental.pallas import tpu as pltpu


def _channel_attention_kernel(x_ref, w1t_ref, w2t_ref, o_ref, *, inv_hw):
    # x_ref  : (TB, C, HW) input block, native dtype
    # w1t_ref: (C, R)  squeeze weight (pre-transposed in the wrapper)
    # w2t_ref: (R, C)  excite  weight (pre-transposed in the wrapper)
    # o_ref  : (TB, C, HW)

    # Global average pool over the spatial (lane) axis, f32 accumulation,
    # divide by the true H*W.
    pooled = jnp.sum(x_ref[...], axis=-1, dtype=jnp.float32) * inv_hw       # (TB, C)

    # 1x1 conv C->R + ReLU, then 1x1 conv R->C + sigmoid (tiny f32 matmuls).
    h = jnp.maximum(
        jnp.dot(pooled, w1t_ref[...].astype(jnp.float32),
                preferred_element_type=jnp.float32), 0.0)                    # (TB, R)
    gate = jax.nn.sigmoid(
        jnp.dot(h, w2t_ref[...].astype(jnp.float32),
                preferred_element_type=jnp.float32))                         # (TB, C)

    # Channel-wise rescale.  Re-read the block from VMEM (keeps the full-block
    # live range short across the matmul/sigmoid chain) and multiply in the
    # input dtype; only the tiny (TB, C) gate ever lives in f32.
    o_ref[...] = x_ref[...] * gate.astype(o_ref.dtype)[:, :, None]


def _plan_tiling(B, C, HW, itemsize):
    """Pick (TB, buffer_count, vmem_limit_bytes) from actual VMEM capacity."""
    try:
        vmem_cap = int(pltpu.get_tpu_info().vmem_capacity_bytes)
    except Exception:
        vmem_cap = 64 * 1024 * 1024          # conservative default (v7x per-TC)

    budget = int(vmem_cap * 0.6)             # headroom for weights/compiler scratch
    per_elem = 2 * C * HW * itemsize         # in + out bytes for ONE batch element
    step_cap = min(budget // 2, 16 * 1024 * 1024)   # in+out bytes per grid step

    divisors = [d for d in range(1, B + 1) if B % d == 0]
    min_steps = min(B, 4)                    # >= 2 blocks per TC on v7x when B allows

    fitting = [d for d in divisors
               if per_elem * d <= step_cap and B // d >= min_steps]
    if fitting:
        tb = max(fitting)
        # v5e / v6e (128 MiB VMEM): spend the headroom on a deeper pipeline.
        if vmem_cap >= 96 * 1024 * 1024 and 3 * per_elem * tb <= budget:
            buffers = 3
        else:
            buffers = 2
    else:
        # A single batch element exceeds the per-step cap.
        tb = 1
        buffers = 2 if 2 * per_elem <= budget else 1
        # TODO(synk): for extreme C*HW where even one slab alone exceeds VMEM, a
        # spatial grid axis with a 2-pass pool-then-scale structure is required.

    pipeline_bytes = buffers * per_elem * tb
    vmem_limit = min(int(vmem_cap * 0.9), pipeline_bytes + (8 << 20))
    vmem_limit = max(vmem_limit, 32 * 1024 * 1024)
    return tb, buffers, vmem_limit


def _big_spec(block_shape, index_map, buffers):
    """BlockSpec for the big streamed arrays, optionally with non-default buffering."""
    if buffers == 2:                          # pipeline default
        return pl.BlockSpec(block_shape, index_map)
    try:
        return pl.BlockSpec(block_shape, index_map, pipeline_mode=pl.Buffered(buffers))
    except Exception:
        return pl.BlockSpec(block_shape, index_map)


@jax.jit
def channel_attention(x, w1, w2):
    """x: (B, C, H, W);  w1: (R, C) squeeze weight;  w2: (C, R) excite weight."""
    B, C, H, W = x.shape
    R = w1.shape[0]
    HW = H * W
    dtype = x.dtype
    itemsize = jnp.dtype(dtype).itemsize

    # Free reshape: no padding, no data movement.
    x_flat = x.reshape(B, C, HW)

    # Pre-transpose the tiny weights once in the wrapper.
    w1t = w1.T                                # (C, R)
    w2t = w2.T                                # (R, C)

    TB, buffers, vmem_limit = _plan_tiling(B, C, HW, itemsize)

    kernel = functools.partial(_channel_attention_kernel, inv_hw=1.0 / HW)

    cost = pl.CostEstimate(
        flops=4 * B * C * R + 2 * B * C * HW,            # two tiny matmuls + pool/scale
        transcendentals=B * C,                            # sigmoid
        bytes_accessed=2 * B * C * HW * itemsize
        + 2 * C * R * jnp.dtype(w1.dtype).itemsize,
    )

    out_flat = pl.pallas_call(
        kernel,
        out_shape=jax.ShapeDtypeStruct((B, C, HW), dtype),
        grid_spec=pltpu.PrefetchScalarGridSpec(
            num_scalar_prefetch=0,
            grid=(B // TB,),
            in_specs=[
                _big_spec((TB, C, HW), lambda b: (b, 0, 0), buffers),
                pl.BlockSpec((C, R), lambda b: (0, 0)),
                pl.BlockSpec((R, C), lambda b: (0, 0)),
            ],
            out_specs=_big_spec((TB, C, HW), lambda b: (b, 0, 0), buffers),
        ),
        compiler_params=pltpu.CompilerParams(
            dimension_semantics=("parallel",),
            vmem_limit_bytes=vmem_limit,
        ),
        cost_estimate=cost,
    )(x_flat, w1t, w2t)

    return out_flat.reshape(B, C, H, W)


def _reference(x, w1, w2):
    # Pure-JAX reference mirroring the PyTorch forward.
    avg = jnp.mean(x, axis=(2, 3))                      # (B, C)
    h = jnp.maximum(avg @ w1.T, 0.0)                    # (B, R)
    gate = jax.nn.sigmoid(h @ w2.T)                     # (B, C)
    return x * gate[:, :, None, None]


if __name__ == "__main__":
    key = jax.random.PRNGKey(0)
    k_x, k_w1, k_w2 = jax.random.split(key, 3)

    B, C, H, W = 2, 4, 16, 16
    reduction = 16
    R = max(C // reduction, 8)  # matches PyTorch module: max(C // reduction, 8)

    x = jax.random.normal(k_x, (B, C, H, W), dtype=jnp.float32)
    # Conv2d(C, R, 1, bias=False).weight has shape (R, C, 1, 1) -> squeeze to (R, C).
    w1 = jax.random.normal(k_w1, (R, C), dtype=jnp.float32) * 0.1
    # Conv2d(R, C, 1, bias=False).weight -> (C, R)
    w2 = jax.random.normal(k_w2, (C, R), dtype=jnp.float32) * 0.1

    out = channel_attention(x, w1, w2)
    jax.block_until_ready(out)

    ref = _reference(x, w1, w2)
    assert out.shape == ref.shape, "shape mismatch vs reference"
    assert jnp.allclose(out, ref, atol=1e-5, rtol=1e-5), "mismatch vs reference"

    print("KERNEL_OK")
</pallas_src>

<mosaic_0001>
module attributes {stable_mosaic.version = 11 : i64} {
  func.func @_channel_attention_kernel(%arg0: i32, %arg1: memref<1x4x256xf32, #tpu.memory_space<vmem>>, %arg2: memref<4x8xf32, #tpu.memory_space<vmem>>, %arg3: memref<8x4xf32, #tpu.memory_space<vmem>>, %arg4: memref<1x4x256xf32, #tpu.memory_space<vmem>>) attributes {dimension_semantics = [#tpu.dimension_semantics<parallel>], iteration_bounds = array<i64: 2>, scalar_prefetch = 0 : i64, scratch_operands = 0 : i64, tpu.core_type = #tpu.core_type<tc>, window_params = [{transform_indices = @transform_0, window_bounds = array<i64: 1, 4, 256>}, {pipeline_mode = #tpu.pipeline_mode<synchronous>, transform_indices = @transform_1, window_bounds = array<i64: 4, 8>}, {pipeline_mode = #tpu.pipeline_mode<synchronous>, transform_indices = @transform_2, window_bounds = array<i64: 8, 4>}, {transform_indices = @transform_3, window_bounds = array<i64: 1, 4, 256>}]} {
    %c0 = arith.constant 0 : index
    %c0_0 = arith.constant 0 : index
    %c0_1 = arith.constant 0 : index
    %0 = vector.load %arg1[%c0, %c0_0, %c0_1] : memref<1x4x256xf32, #tpu.memory_space<vmem>>, vector<1x4x256xf32>
    %cst = arith.constant dense<0.000000e+00> : vector<1x4xf32>
    %1 = vector.multi_reduction <add>, %0, %cst [2] : vector<1x4x256xf32> to vector<1x4xf32>
    %cst_2 = arith.constant 3.906250e-03 : f32
    %2 = vector.broadcast %cst_2 : f32 to vector<1x4xf32>
    %3 = arith.mulf %1, %2 : vector<1x4xf32>
    %c0_3 = arith.constant 0 : index
    %c0_4 = arith.constant 0 : index
    %4 = vector.load %arg2[%c0_3, %c0_4] : memref<4x8xf32, #tpu.memory_space<vmem>>, vector<4x8xf32>
    %cst_5 = arith.constant dense<0.000000e+00> : vector<1x8xf32>
    %5 = tpu.matmul %3, %4, %cst_5 {dimension_numbers = #tpu.dot_dimension_numbers<[1], [0], [0], [1], [0, 0, 1, 1], [], []>} : vector<1x4xf32>, vector<4x8xf32>, vector<1x8xf32> -> vector<1x8xf32>
    %cst_6 = arith.constant 0.000000e+00 : f32
    %6 = vector.broadcast %cst_6 : f32 to vector<1x8xf32>
    %7 = arith.maximumf %5, %6 : vector<1x8xf32>
    %c0_7 = arith.constant 0 : index
    %c0_8 = arith.constant 0 : index
    %8 = vector.load %arg3[%c0_7, %c0_8] : memref<8x4xf32, #tpu.memory_space<vmem>>, vector<8x4xf32>
    %cst_9 = arith.constant dense<0.000000e+00> : vector<1x4xf32>
    %9 = tpu.matmul %7, %8, %cst_9 {dimension_numbers = #tpu.dot_dimension_numbers<[1], [0], [0], [1], [0, 0, 1, 1], [], []>} : vector<1x8xf32>, vector<8x4xf32>, vector<1x4xf32> -> vector<1x4xf32>
    %10 = arith.negf %9 : vector<1x4xf32>
    %11 = math.exp %10 : vector<1x4xf32>
    %cst_10 = arith.constant 1.000000e+00 : f32
    %12 = vector.broadcast %cst_10 : f32 to vector<1x4xf32>
    %13 = arith.addf %12, %11 : vector<1x4xf32>
    %14 = arith.divf %12, %13 : vector<1x4xf32>
    %c0_11 = arith.constant 0 : index
    %c0_12 = arith.constant 0 : index
    %c0_13 = arith.constant 0 : index
    %15 = vector.load %arg1[%c0_11, %c0_12, %c0_13] : memref<1x4x256xf32, #tpu.memory_space<vmem>>, vector<1x4x256xf32>
    %16 = vector.shape_cast %14 : vector<1x4xf32> to vector<1x4x1xf32>
    %17 = vector.broadcast %16 : vector<1x4x1xf32> to vector<1x4x256xf32>
    %18 = arith.mulf %15, %17 : vector<1x4x256xf32>
    %c0_14 = arith.constant 0 : index
    %c0_15 = arith.constant 0 : index
    %c0_16 = arith.constant 0 : index
    %19 = vector.load %arg4[%c0_14, %c0_15, %c0_16] : memref<1x4x256xf32, #tpu.memory_space<vmem>>, vector<1x4x256xf32>
    tpu.vector_store %arg4[%c0_14, %c0_15, %c0_16], %18 {strides = array<i32>} : memref<1x4x256xf32, #tpu.memory_space<vmem>>, vector<1x4x256xf32>,
    return
  }
  func.func @transform_0(%arg0: i32) -> (i32, i32, i32) {
    %c0_i32 = arith.constant 0 : i32
    %c0_i32_0 = arith.constant 0 : i32
    %c0_i32_1 = arith.constant 0 : i32
    return %arg0, %c0_i32, %c0_i32_0 : i32, i32, i32
  }
  func.func @transform_1(%arg0: i32) -> (i32, i32) {
    %c0_i32 = arith.constant 0 : i32
    %c0_i32_0 = arith.constant 0 : i32
    %c0_i32_1 = arith.constant 0 : i32
    return %c0_i32, %c0_i32_0 : i32, i32
  }
  func.func @transform_2(%arg0: i32) -> (i32, i32) {
    %c0_i32 = arith.constant 0 : i32
    %c0_i32_0 = arith.constant 0 : i32
    %c0_i32_1 = arith.constant 0 : i32
    return %c0_i32, %c0_i32_0 : i32, i32
  }
  func.func @transform_3(%arg0: i32) -> (i32, i32, i32) {
    %c0_i32 = arith.constant 0 : i32
    %c0_i32_0 = arith.constant 0 : i32
    %c0_i32_1 = arith.constant 0 : i32
    return %arg0, %c0_i32, %c0_i32_0 : i32, i32, i32
  }
}

</mosaic_0001>

<bundles_post_ra>
// kernel: channel_attention.1
= control target key start
LH: loop header
LB: loop body
LE: loop exit
PB: predicated region body
PF: predicated region fallthrough
CT: control target
= control target key end

     0   :  { %s391_s12 = smov 0   ;;  %s421_s0 = inlined_call_operand.vmem [shape: f32[2,4,256], index: 0, kind: input, shape index: {}]   ;;  %s422_s1 = inlined_call_operand.vmem [shape: f32[4,8], index: 1, kind: input, shape index: {}]   ;;  %s423_s2 = inlined_call_operand.vmem [shape: f32[8,4], index: 2, kind: input, shape index: {}]   ;;  %s424_s3 = inlined_call_operand.vmem [shape: f32[2,4,256], index: 3, kind: output, shape index: {}]  }
   0x1 LB: > { %s331_s13 = sadd.s32 4294967295, %s368_s12   ;;  %p335_p0 = scmp.ge.s32.totalorder %s368_s12, 1  ;;  %s368_s12 = sphi %s391_s12, %s13_s12  }
   0x2   : > { %p137_p1 = scmp.lt.s32.totalorder %s368_s12, 3 }
   0x4   : > { %p138_p2 = pnand %p335_p0, %p137_p1 }
   0x5   : > { %p161_p3 = scmp.lt.s32.totalorder (!%p138_p2), %s331_s13, 1 }
   0x6   : > { %141 = sbr.rel (%p138_p2) target bundleno = 550 (0x226), region = 32 }
   0xb   : > { %s426_s13 = smov (!%p161_p3, %s331_s13), 1  ;;  %vm178_vm0 = vcmask 1043456   ;;  %v185_v6 = vld [vmem:[%s422_s1] sm:$0xf]  ;;  %v187_v7 = vlaneseq  ;;  %vm190_vm1 = vcmask 31744   ;;  %vm218_vm2 = vcmask 64512  }
   0xc   : > { %s346_s14 = sshll.u32 %s426_s13, 3  ;;  %340 = vmatpush.msk.msra.mxu0 %vm178_vm0, %v185_v6  ;;  %v217_v12 = vld [vmem:[%s423_s2] sm:$0xff]  ;;  %v370_v31 = vmov 839922192  }
   0xd   : > { %s165_s17 = scalar_lea.vmem %s421_s0, %s346_s14  ;;  %v188_v8 = vand.u32 127, %v187_v7  ;;  %237 = vmatpush.msra.mxu1 %v217_v12  ;;  %v263_v15 = vshrl.u32 %v187_v7, 7  ;;  %v270_v32 = vunpack.c.l.s4 %v370_v31  ;;  %s170_s24 = scalar_lea.vmem %s424_s3, %s346_s14 }
   0xe   : > { %v171_v0 = vld [vmem:[%s165_s17] sm:$0xff] }
   0xf   : > { %173 = vst [vmem:[#allocation1] ss:$2 sm:$0xff] %v171_v0  ;;  %357 = vset.pattern.permute.xlu0 %v263_v15  ;;  %v271_v33 = vunpack.c.0.s8 %v270_v32 }
  0x16   : > { %v174_v1 = vld.sshfl [vmem:[#allocation1] sm:$0xff pattern:$0x75316420]  ;;  %v175_v2 = vld.sshfl [vmem:[#allocation1 + $0x8] sm:$0xff pattern:$0x75316420] }
  0x17   : > { %v179_v3 = vsel %vm178_vm0, %v174_v1, 0.0  ;;  %v180_v4 = vsel %vm178_vm0, %v175_v2, 0.0 }
  0x18   : > { %v181_v5 = vadd.f32 %v180_v4, %v179_v3 }
  0x1a   : > { %182 = vadd.xlane.f32.xlu0 %v181_v5 }
  0x8d   : > { %v183_v9 = vpop.xlane.xlu0 %182 }
  0x8e   : > { %v184_v10 = vmul.f32 0.00390625, %v183_v9 }
  0x90   : > { %v189_v11 = vperm.slane %v184_v10, %v188_v8 }
  0x92   : > { %341 = vmatmul.msk.f32.vlgmr.msra.gmra.mxu0 %vm190_vm1, %v189_v11 }
 0x10f   : > { %v213_v13 = vpop.f32.mrf.mxu0 }
 0x110   : > { %v216_v14 = vmax.f32 %v213_v13, 0.0 }
 0x112   : > { %342 = vmatmul.msk.f32.vlgmr.msra.gmra.mxu1 %vm218_vm2, %v216_v14 }
 0x18f   : > { %v239_v16 = vpop.f32.mrf.mxu1 }
 0x190   : > { %v343_v17 = vmul.f32 -1.442695, %v239_v16 }
 0x192   : > { %358 = vpow2.f32 %v343_v17 }
 0x198   : > { %v359_v18 = vpop.eup %358 }
 0x199   : > { %v245_v19 = vadd.f32 1.0, %v359_v18 }
 0x19b   : > { %360 = vrcp.f32 %v245_v19  ;;  %v257_v23 = vand.u32 2147483648, %v245_v19  ;;  %v255_v25 = vand.u32 2147483647, %v245_v19  ;;  %vm251_vm4 = vweird.f32 %v245_v19 }
 0x19d   : > { %v258_v27 = vor.u32 1.1754944e-38, %v257_v23  ;;  %vm256_vm6 = vcmp.eq.f32.partialorder %v255_v25, 8.507059e+37 }
 0x1a1   : > { %v361_v20 = vpop.eup %360 }
 0x1a2   : > { %v247_v21 = vmul.f32 %v361_v20, %v245_v19  ;;  %vm252_vm3 = vweird.f32 %v361_v20 }
 0x1a3   : > { %vm253_vm5 = vmor %vm251_vm4, %vm252_vm3 }
 0x1a4   : > { %v248_v22 = vsub.f32 1.0, %v247_v21 }
 0x1a6   : > { %v249_v24 = vmul.f32 %v361_v20, %v248_v22 }
 0x1a8   : > { %v250_v26 = vadd.f32 %v361_v20, %v249_v24 }
 0x1aa   : > { %v254_v28 = vsel %vm253_vm5, %v361_v20, %v250_v26 }
 0x1ab   : > { %v259_v29 = vsel %vm256_vm6, %v258_v27, %v254_v28 }
 0x1ac   : > { %v261_v30 = vperm.slane %v259_v29, 0 }
 0x1ae   : > { %266 = vperm.xlu0 %357, %v261_v30  }
 0x220   : > { %v267_v34 = vpop.permute.xlu0 %266 }
 0x221   : > { %v272_v35 = vperm.slane %v267_v34, %v271_v33 }
 0x223   : > { %v274_v36 = vmul.f32 %v272_v35, %v171_v0 }
 0x225   : > { %275 = vst [vmem:[%s170_s24] sm:$0xff] %v274_v36 }
 0x226 PF: > { %s13_s12 = sadd.s32 1, %s368_s12  }
 0x227   : > { %p10_p4 = scmp.ge.s32.totalorder %s13_s12, 4  }
 0x229   :  { %12 = sbr.rel (!%p10_p4) target bundleno = 1 (0x1), region = 62 }

</bundles_post_ra>
